<compile_context>
chip_gen: v7x
topology: tpu7x:2x2x1
jax: 0.10.0
libtpu: 0.0.40
codegen_flags: <defaults>
</compile_context>

<pallas_src>
import functools

import jax
import jax.numpy as jnp
from jax.experimental import pallas as pl
from jax.experimental.pallas import tpu as pltpu


def _zlpr_smooth_kernel(y_pred_ref, y_true_ref, row_loss_ref, *, eps):
    y_true = y_true_ref[...].astype(jnp.float32)
    y_pred = y_pred_ref[...].astype(jnp.float32)

    # Label smoothing, constant-folded:
    #   y = y - 0.1*y ; y = y + 0.1*(0.9 - y)   ==   0.81*y + 0.09
    y_true = 0.81 * y_true + 0.09
    y_pred = (1.0 - 2.0 * y_true) * y_pred

    t_eps = y_true * eps
    y_pred_neg = y_pred - t_eps            # y_pred - y_true*eps
    y_pred_pos = y_pred - eps + t_eps      # y_pred - (1 - y_true)*eps

    # logsumexp over the class dim with an implicit appended zero column
    # (== torch.cat([x, zeros], dim=-1) then logsumexp(dim=-1)).
    def lse_with_zero(x):
        m = jnp.maximum(jnp.max(x, axis=-1, keepdims=True), 0.0)
        s = jnp.sum(jnp.exp(x - m), axis=-1, keepdims=True) + jnp.exp(-m)
        return m + jnp.log(s)              # (TB, 1)

    row_loss_ref[...] = lse_with_zero(y_pred_neg) + lse_with_zero(y_pred_pos)


def _round_up(x, m):
    return ((x + m - 1) // m) * m


def _default_block_b(batch, n_classes):
    # ~9 live f32 tiles per step (2 inputs x 2 pipeline buffers + elementwise
    # temporaries).  Keep them inside ~16 MiB so the kernel comfortably fits
    # v7x's 32 MiB scoped VMEM as well as v5e/v6e.
    budget_bytes = 16 * 1024 * 1024
    per_row_bytes = 9 * n_classes * 4
    tb = budget_bytes // max(per_row_bytes, 1)
    tb = max(8, min(1024, (tb // 8) * 8))
    # Don't blow tiny batches up to a huge padded tile.
    tb = min(tb, _round_up(batch, 8))
    return tb


def zlpr_smooth(y_pred, y_true, eps=1.0, block_b=None):
    """Pallas implementation of zlpr_smooth.forward. Inputs: (B, C). Returns scalar f32."""
    assert y_pred.shape == y_true.shape and y_pred.ndim == 2
    B, C = y_pred.shape

    if block_b is None:
        block_b = _default_block_b(B, C)
    block_b = max(8, (block_b // 8) * 8)        # keep sublane-aligned

    num_blocks = pl.cdiv(B, block_b)
    B_pad = num_blocks * block_b
    if B_pad != B:
        pad = ((0, B_pad - B), (0, 0))
        y_pred = jnp.pad(y_pred, pad)
        y_true = jnp.pad(y_true, pad)

    row_loss = pl.pallas_call(
        functools.partial(_zlpr_smooth_kernel, eps=float(eps)),
        out_shape=jax.ShapeDtypeStruct((B_pad, 1), jnp.float32),
        grid=(num_blocks,),
        in_specs=[
            pl.BlockSpec((block_b, C), lambda i: (i, 0)),
            pl.BlockSpec((block_b, C), lambda i: (i, 0)),
        ],
        out_specs=pl.BlockSpec((block_b, 1), lambda i: (i, 0)),
        compiler_params=pltpu.CompilerParams(
            dimension_semantics=("parallel",),
            vmem_limit_bytes=32 * 1024 * 1024,
        ),
    )(y_pred, y_true)

    # Final tiny reduction in the wrapper; padded rows are sliced off.
    return jnp.sum(row_loss[:B, 0]) / B


def _zlpr_smooth_ref(y_pred, y_true, eps=1.0):
    y_pred = y_pred.astype(jnp.float32)
    y_true = y_true.astype(jnp.float32)
    y_true = y_true - 0.1 * y_true
    y_true = y_true + 0.1 * (0.9 - y_true)
    y_pred = (1 - 2 * y_true) * y_pred
    y_pred_neg = y_pred - y_true * eps
    y_pred_pos = y_pred - (1 - y_true) * eps
    zeros = jnp.zeros_like(y_pred[..., :1])
    y_pred_neg = jnp.concatenate([y_pred_neg, zeros], axis=-1)
    y_pred_pos = jnp.concatenate([y_pred_pos, zeros], axis=-1)
    neg_loss = jax.scipy.special.logsumexp(y_pred_neg, axis=-1)
    pos_loss = jax.scipy.special.logsumexp(y_pred_pos, axis=-1)
    return jnp.mean(neg_loss + pos_loss)


if __name__ == "__main__":
    key = jax.random.PRNGKey(0)
    k1, k2 = jax.random.split(key)

    # Small multi-label problem: 12 samples, 128 classes (lane-dense class dim).
    # block_b=8 forces 2 grid blocks plus a padded tail, exercising the tiled path.
    B, C = 12, 128
    y_pred = jax.random.normal(k1, (B, C), dtype=jnp.float32) * 3.0
    y_true = (jax.random.uniform(k2, (B, C)) > 0.7).astype(jnp.float32)

    loss = jax.block_until_ready(zlpr_smooth(y_pred, y_true, eps=1.0, block_b=8))
    ref = jax.block_until_ready(_zlpr_smooth_ref(y_pred, y_true, eps=1.0))

    assert jnp.allclose(loss, ref, rtol=1e-5, atol=1e-5), (loss, ref)
    print("KERNEL_OK")
</pallas_src>

<mosaic_0001>
module attributes {stable_mosaic.version = 11 : i64} {
  func.func @_zlpr_smooth_kernel(%arg0: i32, %arg1: memref<8x128xf32, #tpu.memory_space<vmem>>, %arg2: memref<8x128xf32, #tpu.memory_space<vmem>>, %arg3: memref<8x1xf32, #tpu.memory_space<vmem>>) attributes {dimension_semantics = [#tpu.dimension_semantics<parallel>], iteration_bounds = array<i64: 2>, scalar_prefetch = 0 : i64, scratch_operands = 0 : i64, tpu.core_type = #tpu.core_type<tc>, window_params = [{transform_indices = @transform_0, window_bounds = array<i64: 8, 128>}, {transform_indices = @transform_1, window_bounds = array<i64: 8, 128>}, {transform_indices = @transform_2, window_bounds = array<i64: 8, 1>}]} {
    %c0 = arith.constant 0 : index
    %c0_0 = arith.constant 0 : index
    %0 = vector.load %arg2[%c0, %c0_0] : memref<8x128xf32, #tpu.memory_space<vmem>>, vector<8x128xf32>
    %c0_1 = arith.constant 0 : index
    %c0_2 = arith.constant 0 : index
    %1 = vector.load %arg1[%c0_1, %c0_2] : memref<8x128xf32, #tpu.memory_space<vmem>>, vector<8x128xf32>
    %cst = arith.constant 8.100000e-01 : f32
    %2 = vector.broadcast %cst : f32 to vector<8x128xf32>
    %3 = arith.mulf %2, %0 : vector<8x128xf32>
    %cst_3 = arith.constant 9.000000e-02 : f32
    %4 = vector.broadcast %cst_3 : f32 to vector<8x128xf32>
    %5 = arith.addf %3, %4 : vector<8x128xf32>
    %cst_4 = arith.constant 2.000000e+00 : f32
    %6 = vector.broadcast %cst_4 : f32 to vector<8x128xf32>
    %7 = arith.mulf %6, %5 : vector<8x128xf32>
    %cst_5 = arith.constant 1.000000e+00 : f32
    %8 = vector.broadcast %cst_5 : f32 to vector<8x128xf32>
    %9 = arith.subf %8, %7 : vector<8x128xf32>
    %10 = arith.mulf %9, %1 : vector<8x128xf32>
    %cst_6 = arith.constant 1.000000e+00 : f32
    %11 = vector.broadcast %cst_6 : f32 to vector<8x128xf32>
    %12 = arith.mulf %5, %11 : vector<8x128xf32>
    %13 = arith.subf %10, %12 : vector<8x128xf32>
    %cst_7 = arith.constant 1.000000e+00 : f32
    %14 = vector.broadcast %cst_7 : f32 to vector<8x128xf32>
    %15 = arith.subf %10, %14 : vector<8x128xf32>
    %16 = arith.addf %15, %12 : vector<8x128xf32>
    %cst_8 = arith.constant dense<0xFF800000> : vector<8xf32>
    %17 = vector.multi_reduction <maximumf>, %13, %cst_8 [1] : vector<8x128xf32> to vector<8xf32>
    %18 = vector.shape_cast %17 : vector<8xf32> to vector<8x1xf32>
    %cst_9 = arith.constant 0.000000e+00 : f32
    %19 = vector.broadcast %cst_9 : f32 to vector<8x1xf32>
    %20 = arith.maximumf %18, %19 : vector<8x1xf32>
    %21 = vector.broadcast %20 : vector<8x1xf32> to vector<8x128xf32>
    %22 = arith.subf %13, %21 : vector<8x128xf32>
    %23 = math.exp %22 : vector<8x128xf32>
    %cst_10 = arith.constant dense<0.000000e+00> : vector<8xf32>
    %24 = vector.multi_reduction <add>, %23, %cst_10 [1] : vector<8x128xf32> to vector<8xf32>
    %25 = vector.shape_cast %24 : vector<8xf32> to vector<8x1xf32>
    %cst_11 = arith.constant 0.000000e+00 : f32
    %26 = vector.broadcast %cst_11 : f32 to vector<8x1xf32>
    %27 = arith.subf %26, %20 : vector<8x1xf32>
    %28 = math.exp %27 : vector<8x1xf32>
    %29 = arith.addf %25, %28 : vector<8x1xf32>
    %30 = math.log %29 : vector<8x1xf32>
    %31 = arith.addf %20, %30 : vector<8x1xf32>
    %cst_12 = arith.constant dense<0xFF800000> : vector<8xf32>
    %32 = vector.multi_reduction <maximumf>, %16, %cst_12 [1] : vector<8x128xf32> to vector<8xf32>
    %33 = vector.shape_cast %32 : vector<8xf32> to vector<8x1xf32>
    %cst_13 = arith.constant 0.000000e+00 : f32
    %34 = vector.broadcast %cst_13 : f32 to vector<8x1xf32>
    %35 = arith.maximumf %33, %34 : vector<8x1xf32>
    %36 = vector.broadcast %35 : vector<8x1xf32> to vector<8x128xf32>
    %37 = arith.subf %16, %36 : vector<8x128xf32>
    %38 = math.exp %37 : vector<8x128xf32>
    %cst_14 = arith.constant dense<0.000000e+00> : vector<8xf32>
    %39 = vector.multi_reduction <add>, %38, %cst_14 [1] : vector<8x128xf32> to vector<8xf32>
    %40 = vector.shape_cast %39 : vector<8xf32> to vector<8x1xf32>
    %cst_15 = arith.constant 0.000000e+00 : f32
    %41 = vector.broadcast %cst_15 : f32 to vector<8x1xf32>
    %42 = arith.subf %41, %35 : vector<8x1xf32>
    %43 = math.exp %42 : vector<8x1xf32>
    %44 = arith.addf %40, %43 : vector<8x1xf32>
    %45 = math.log %44 : vector<8x1xf32>
    %46 = arith.addf %35, %45 : vector<8x1xf32>
    %47 = arith.addf %31, %46 : vector<8x1xf32>
    %c0_16 = arith.constant 0 : index
    %c0_17 = arith.constant 0 : index
    %48 = vector.load %arg3[%c0_16, %c0_17] : memref<8x1xf32, #tpu.memory_space<vmem>>, vector<8x1xf32>
    tpu.vector_store %arg3[%c0_16, %c0_17], %47 {strides = array<i32>} : memref<8x1xf32, #tpu.memory_space<vmem>>, vector<8x1xf32>,
    return
  }
  func.func @transform_0(%arg0: i32) -> (i32, i32) {
    %c0_i32 = arith.constant 0 : i32
    %c0_i32_0 = arith.constant 0 : i32
    return %arg0, %c0_i32 : i32, i32
  }
  func.func @transform_1(%arg0: i32) -> (i32, i32) {
    %c0_i32 = arith.constant 0 : i32
    %c0_i32_0 = arith.constant 0 : i32
    return %arg0, %c0_i32 : i32, i32
  }
  func.func @transform_2(%arg0: i32) -> (i32, i32) {
    %c0_i32 = arith.constant 0 : i32
    %c0_i32_0 = arith.constant 0 : i32
    return %arg0, %c0_i32 : i32, i32
  }
}

</mosaic_0001>

<bundles_post_ra>
// kernel: tpu_custom_call.1
= control target key start
LH: loop header
LB: loop body
LE: loop exit
PB: predicated region body
PF: predicated region fallthrough
CT: control target
= control target key end

     0   :  { %7 = vsyncpa [#allocation3], 0  ;;  %s668_s0 = inlined_call_operand.hbm [shape: f32[16,128], index: 0, kind: input, shape index: {}]   ;;  %s669_s1 = inlined_call_operand.hbm [shape: f32[16,128], index: 1, kind: input, shape index: {}]   ;;  %s670_s2 = inlined_call_operand.vmem [shape: f32[16,1], index: 2, kind: output, shape index: {}]  }
   0x1   :  { %9 = vsyncpa [#allocation3 + $0x1], 0 }
   0x2   :  { %10 = vsyncpa [#allocation5], 0 }
   0x3   :  { %12 = vsyncpa [#allocation5 + $0x1], 0  ;;  %s514_s9 = smov 0   ;;  %s516_s10 = smov 0  }
   0x4   :  { %s518_s11 = smov 0   ;;  %s520_s12 = smov 0  }
   0x5 LB: > { %s533_s13 = sadd.s32 4294967295, %s495_s12   ;;  %s536_s14 = sadd.s32 1, %s495_s12   ;;  %s495_s12 = sphi %s520_s12, %s682_s12   ;;  %s491_s11 = sphi %s518_s11, %s681_s11   ;;  %s487_s10 = sphi %s516_s10, %s680_s10   ;;  %s483_s9 = sphi %s514_s9, %s679_s9  }
   0x6   : > { %s22_s15 = ssub.s32 %s495_s12, %s536_s14  ;;  %s25_s16 = sadd.s32 1, %s491_s11 }
   0x7   : > { %p23_p0 = scmp.eq.s32.totalorder %s22_s15, 0  ;;  %p32_p1 = scmp.ne.s32.totalorder %s491_s11, %s487_s10 }
   0x8   : > { %p33_p2 = scmp.eq.s32.totalorder %s495_s12, 0  ;;  %p38_p3 = scmp.ne.s32.totalorder %s487_s10, %s483_s9 }
   0x9   : > { %s546_s17 = scalar_select %p23_p0, %s491_s11, %s25_s16  }
   0xa   : > { %p34_p4 = por %p33_p2, %p32_p1  ;;  %p39_p5 = scmp.eq.s32.totalorder %s533_s13, 0 }
   0xb   : > { %p352_p6 = scmp.lt.s32.totalorder %s495_s12, 2  ;;  %s555_s19 = sand.u32 1, %s491_s11  }
   0xc   : > { %p550_p7 = por %p39_p5, %p38_p3  ;;  %s330_s20 = sshll.u32 %s555_s19, 3 }
   0xd   : > { %s331_s21 = sshll.u32 %s495_s12, 7  ;;  %s118_s25 = scalar_lea.vmem [#allocation2], %s330_s20 }
   0xe   : > { %s672_s18 = scalar_select %p550_p7, 1, 0 }
   0xf   : > { %s564_s24 = scalar_lea.hbm %s668_s0, %s331_s21  ;;  %s125_s26 = sshll.u32 %s118_s25, 4  ;;  %s568_s26 = int_to_ptr.vmem [resolvable:$true] %s125_s26 }
  0x10   : > { %p570_p8 = pnand %p352_p6, %p34_p4  ;;  %s115_s28 = scalar_lea.sflag [#allocation3], %s555_s19 }
  0x11   : > { %s397_s29 = scalar_lea.hbm %s564_s24, 128  ;;  %s402_s4 = scalar_lea.hbm %s668_s0, 256 }
  0x12   : > { %p398_p11 = scmp.ne.s32.totalorder %s564_s24, %s397_s29  ;;  %p399_p12 = pneg %p570_p8 }
  0x13   : > { %p403_p1 = scmp.lt.u32.totalorder %s564_s24, %s668_s0  ;;  %p404_p2 = scmp.lt.u32.totalorder %s402_s4, %s397_s29 }
  0x14   : > { %p400_p13 = pnand %p399_p12, %p398_p11  ;;  %p406_p4 = scmp.lt.u32.totalorder %s397_s29, %s564_s24 }
  0x15   : > { %p405_p3 = por %p404_p2, %p403_p1 }
  0x16   : > { %p401_p0 = pneg %p400_p13 }
  0x17   : > { %p407_p5 = por %p406_p4, %p405_p3 }
  0x19   : > { %p408_p6 = pnand %p407_p5, %p401_p0 }
  0x1b   : > { %411 = shalt.err (!%p408_p6)
}
  0x1c   : > { %s412_s7 = scalar_lea.vmem %s568_s26, 128  ;;  %s497_s8 = smov [#allocation2]  }
  0x1d   : > { %p413_p11 = scmp.ne.s32.totalorder %s568_s26, %s412_s7  ;;  %s417_s9 = sshll.u32 %s497_s8, 4  ;;  %s418_s9 = int_to_ptr.vmem [resolvable:$false] %s417_s9 }
  0x1e   : > { %s419_s15 = scalar_lea.vmem %s418_s9, 256  ;;  %p420_p10 = scmp.lt.s32.totalorder %s568_s26, %s418_s9 }
  0x1f   : > { %p415_p13 = pnand %p413_p11, %p399_p12  ;;  %p421_p1 = scmp.lt.s32.totalorder %s419_s15, %s412_s7 }
  0x21   : > { %p416_p9 = pneg %p415_p13  ;;  %p422_p2 = por %p421_p1, %p420_p10 }
  0x23   : > { %p423_p3 = pnand %p422_p2, %p416_p9 }
  0x25   : > { %426 = shalt.err (!%p423_p3)
}
  0x26   : > { %348 = dma.hbm_to_vmem [thread:$0]  (!%p570_p8), %s564_s24, 128, %s568_s26, %s115_s28  }
  0x27   : > { %p674_p0 = scmp.lt.s32.totalorder %s495_s12, 3  ;;  %p675_p4 = scmp.ge.s32.totalorder %s495_s12, 1 }
  0x28   : > { %s615_s25 = scalar_lea.hbm %s669_s1, %s331_s21  ;;  %s136_s29 = scalar_lea.vmem [#allocation4], %s330_s20 }
  0x29   : > { %p606_p5 = pnand %p675_p4, %p674_p0  ;;  %s143_s30 = sshll.u32 %s136_s29, 4  ;;  %s144_s30 = int_to_ptr.vmem [resolvable:$true] %s143_s30 }
  0x2a   : > { %s133_s24 = scalar_lea.sflag [#allocation5], %s555_s19  ;;  %s427_s26 = scalar_lea.hbm %s615_s25, 128 }
  0x2b   : > { %s676_s16 = scalar_select %p606_p5, 1, 0 }
  0x2c   : > { %p428_p9 = scmp.ne.s32.totalorder %s615_s25, %s427_s26  ;;  %s432_s21 = scalar_lea.hbm %s669_s1, 256 }
  0x2d   : > { %p433_p11 = scmp.lt.u32.totalorder %s615_s25, %s669_s1  ;;  %p434_p13 = scmp.lt.u32.totalorder %s432_s21, %s427_s26 }
  0x2e   : > { %p430_p10 = pnand %p428_p9, %p399_p12  ;;  %p436_p2 = scmp.lt.u32.totalorder %s427_s26, %s615_s25 }
  0x2f   : > { %p435_p1 = por %p434_p13, %p433_p11 }
  0x30   : > { %p431_p6 = pneg %p430_p10 }
  0x31   : > { %p437_p3 = por %p436_p2, %p435_p1 }
  0x33   : > { %p438_p0 = pnand %p437_p3, %p431_p6 }
  0x35   : > { %441 = shalt.err (!%p438_p0)
}
  0x36   : > { %s442_s19 = scalar_lea.vmem %s144_s30, 128  ;;  %s498_s20 = smov [#allocation4]  }
  0x37   : > { %p443_p4 = scmp.ne.s32.totalorder %s144_s30, %s442_s19  ;;  %s447_s5 = sshll.u32 %s498_s20, 4  ;;  %s448_s5 = int_to_ptr.vmem [resolvable:$false] %s447_s5 }
  0x38   : > { %s449_s6 = scalar_lea.vmem %s448_s5, 256  ;;  %p450_p7 = scmp.lt.s32.totalorder %s144_s30, %s448_s5 }
  0x39   : > { %p445_p9 = pnand %p443_p4, %p399_p12  ;;  %p451_p5 = scmp.lt.s32.totalorder %s449_s6, %s442_s19 }
  0x3b   : > { %p446_p10 = pneg %p445_p9  ;;  %p452_p11 = por %p451_p5, %p450_p7 }
  0x3d   : > { %p453_p13 = pnand %p452_p11, %p446_p10 }
  0x3f   : > { %456 = shalt.err (!%p453_p13)
}
  0x40   : > { %351 = dma.hbm_to_vmem [thread:$0]  (!%p570_p8), %s615_s25, 128, %s144_s30, %s133_s24  }
  0x41   : > { %p677_p6 = scmp.ne.s32.totalorder %s676_s16, 0 }
  0x42   : > { %s154_s7 = sand.u32 (!%p677_p6), 1, %s487_s10   ;;  %p678_p12 = scmp.ne.s32.totalorder (!%p677_p6), %s672_s18, 0 }
  0x43   : > { %152 = sbr.rel (%p677_p6) target bundleno = 415 (0x19f), region = 28  ;;  %s335_s8 = sshll.u32 (!%p677_p6), %s154_s7, 3 }
  0x44   : > { %s155_s9 = scalar_lea.sflag (!%p677_p6), [#allocation3], %s154_s7  ;;  %s158_s15 = scalar_lea.vmem (!%p677_p6), [#allocation2], %s335_s8 }
  0x4a   : > { %474 = dma.done.wait (%p678_p12), %s155_s9, 128  }
  0x4b   : > { %476 = vsyncadd (%p678_p12), %s155_s9, 4294967168  ;;  %s164_s22 = scalar_lea.sflag [#allocation5], %s154_s7  ;;  %s167_s23 = scalar_lea.vmem [#allocation4], %s335_s8 }
  0x4c   : > { %478 = dma.done.wait (%p678_p12), %s164_s22, 128  }
  0x4d   : > { %480 = vsyncadd (%p678_p12), %s164_s22, 4294967168  ;;  %v196_v0 = vld [vmem:[%s167_s23] sm:$0xff]  ;;  %v197_v4 = vld [vmem:[%s158_s15] sm:$0xff]  ;;  %p192_p7 = scmp.lt.s32.totalorder %s533_s13, 1  ;;  %vm237_vm0 = vcmask 7168  }
  0x4e   : > { %v198_v1 = vmul.f32 0.81, %v196_v0 }
  0x4f   : > { %s684_s13 = smov (!%p192_p7, %s533_s13), 1 }
  0x50   : > { %v199_v2 = vadd.f32 0.09, %v198_v1  ;;  %s337_s18 = sshll.u32 %s684_s13, 3 }
  0x51   : > { %s195_s25 = scalar_lea.vmem %s670_s2, %s337_s18 }
  0x52   : > { %v200_v3 = vmul.f32 2.0, %v199_v2 }
  0x54   : > { %v201_v5 = vsub.f32 1.0, %v200_v3 }
  0x56   : > { %v202_v6 = vmul.f32 %v201_v5, %v197_v4 }
  0x58   : > { %v203_v7 = vsub.f32 %v202_v6, %v199_v2  ;;  %v338_v8 = vadd.f32 -1.0, %v202_v6 }
  0x5a   : > { %206 = vmax.xlane.f32.xlu0 %v203_v7  ;;  %v205_v9 = vadd.f32 %v338_v8, %v199_v2 }
  0x5e   : > { %221 = vmax.xlane.f32.xlu0 %v205_v9 }
  0xe7   : > { %v207_v10 = vpop.xlane.xlu0 %206 }
  0xe8   : > { %v208_v11 = vmax.f32 %v207_v10, 0.0 }
  0xea   : > { %v209_v12 = vsub.f32 %v203_v7, %v208_v11  ;;  %v214_v20 = vsub.f32 0.0, %v208_v11 }
  0xeb   : > { %v222_v13 = vpop.xlane.xlu0 %221 }
  0xec   : > { %v223_v14 = vmax.f32 %v222_v13, 0.0  ;;  %v210_v15 = vmul.f32 1.442695, %v209_v12  ;;  %v215_v21 = vmul.f32 1.442695, %v214_v20 }
  0xee   : > { %v224_v16 = vsub.f32 %v205_v9, %v223_v14  ;;  %385 = vpow2.f32 %v210_v15  ;;  %v229_v22 = vsub.f32 0.0, %v223_v14 }
  0xf0   : > { %v225_v17 = vmul.f32 1.442695, %v224_v16  ;;  %v230_v23 = vmul.f32 1.442695, %v229_v22 }
  0xf2   : > { %387 = vpow2.f32 %v225_v17 }
  0xf3   : > { %389 = vpow2.f32 %v215_v21 }
  0xf4   : > { %391 = vpow2.f32 %v230_v23 }
  0xf8   : > { %v386_v18 = vpop.eup %385 }
  0xf9   : > { %212 = vadd.xlane.f32.xlu1 %v386_v18 }
  0xfc   : > { %v388_v19 = vpop.eup %387 }
  0xfd   : > { %227 = vadd.xlane.f32.xlu1 %v388_v19  ;;  %v390_v24 = vpop.eup %389 }
  0xfe   : > { %v392_v27 = vpop.eup %391 }
 0x186   : > { %v213_v25 = vpop.xlane.xlu1 %212 }
 0x187   : > { %v217_v26 = vadd.f32 %v390_v24, %v213_v25 }
 0x189   : > { %393 = vlog2.f32 %v217_v26 }
 0x18a   : > { %v228_v28 = vpop.xlane.xlu1 %227 }
 0x18b   : > { %v232_v29 = vadd.f32 %v392_v27, %v228_v28 }
 0x18d   : > { %395 = vlog2.f32 %v232_v29 }
 0x193   : > { %v394_v30 = vpop.eup %393 }
 0x194   : > { %v219_v31 = vmul.f32 0.6931472, %v394_v30 }
 0x196   : > { %v220_v34 = vadd.f32 %v219_v31, %v208_v11 }
 0x197   : > { %v396_v32 = vpop.eup %395 }
 0x198   : > { %v234_v33 = vmul.f32 0.6931472, %v396_v32 }
 0x19a   : > { %v235_v35 = vadd.f32 %v234_v33, %v223_v14 }
 0x19c   : > { %v236_v36 = vadd.f32 %v235_v35, %v220_v34 }
 0x19e   : > { %238 = vst.msk [vmem:[%s195_s25] sm:$0xff] %vm237_vm0, %v236_v36 }
 0x19f PF: > { %p15_p8 = scmp.ge.s32.totalorder %s536_s14, 4   ;;  %s679_s9 = smov %s487_s10 }
 0x1a0   : > { %s680_s10 = smov %s491_s11  ;;  %s681_s11 = smov %s546_s17 }
 0x1a1   : > { %s682_s12 = smov %s536_s14  ;;  %17 = sbr.rel (!%p15_p8) target bundleno = 5 (0x5), region = 81 }
 0x1a8   :  { %258 = vsyncpa [#allocation3], 1 }
 0x1a9   :  { %260 = vsyncpa [#allocation3 + $0x1], 1 }
 0x1aa   :  { %261 = vsyncpa [#allocation5], 1 }
 0x1ab   :  { %263 = vsyncpa [#allocation5 + $0x1], 1 }

</bundles_post_ra>
